<compile_context>
chip_gen: v6e
topology: v6e:2x2x1
jax: 0.10.0
libtpu: 0.0.40
codegen_flags: <defaults>
</compile_context>

<pallas_src>
import functools

import jax
import jax.numpy as jnp
from jax import lax
from jax.experimental import pallas as pl
from jax.experimental.pallas import tpu as pltpu

BN_EPS = 1e-5


# --------------------------------------------------------------------------
# Kernel
# --------------------------------------------------------------------------
def _contrastive_head_kernel(n_rows,           # static true batch size
                             x_ref,            # (TN, Dp)   f32 batch tile
                             w1_ref,            # (Dp, Dp)  bf16, PyTorch (out,in) layout
                             bn1_ref,           # (8, Dp)   f32 rows: [b1, g1, be1, 0...]
                             w2_ref,            # (Fp, Dp)  bf16, PyTorch (out,in) layout
                             bn2_ref,           # (8, Fp)   f32 rows: [b2, g2, be2, 0...]
                             o_ref,             # (TN, Fp)
                             h_ref,             # VMEM (N, Dp) f32 : staged Linear1 output
                             z_ref,             # VMEM (N, Fp) f32 : staged Linear2 output
                             stats1_ref,        # VMEM (8, Dp) f32 : sum/sumsq -> scale/shift
                             stats2_ref):       # VMEM (8, Fp) f32 : sum/sumsq -> scale/shift
    p = pl.program_id(0)          # phase: 0=lin1, 1=bn1+relu+lin2, 2=bn2+store
    i = pl.program_id(1)          # batch tile
    tn = x_ref.shape[0]
    inv_n = 1.0 / n_rows
    row = pl.multiple_of(i * tn, tn)

    # ---------------- phase 0: Linear1 + BN1 sum/sumsq ----------------
    @pl.when((p == 0) & (i == 0))
    def _init_stats1():
        stats1_ref[...] = jnp.zeros_like(stats1_ref)

    @pl.when(p == 0)
    def _phase0():
        x = x_ref[...].astype(jnp.bfloat16)
        # x @ W1^T on the MXU without materializing a transpose.
        h = lax.dot_general(x, w1_ref[...], (((1,), (1,)), ((), ())),
                            preferred_element_type=jnp.float32)
        h = h + bn1_ref[0:1, :]                               # Linear1 bias
        h_ref[pl.ds(row, tn), :] = h
        stats1_ref[0:1, :] = stats1_ref[0:1, :] + jnp.sum(h, axis=0, keepdims=True)
        stats1_ref[1:2, :] = stats1_ref[1:2, :] + jnp.sum(h * h, axis=0, keepdims=True)

    # -------- phase 1: BN1 + ReLU + Linear2 + BN2 sum/sumsq ------------
    @pl.when((p == 1) & (i == 0))
    def _finalize_stats1():
        mu = stats1_ref[0:1, :] * inv_n
        var = stats1_ref[1:2, :] * inv_n - mu * mu            # E[h^2] - mu^2
        scale = bn1_ref[1:2, :] * lax.rsqrt(var + BN_EPS)     # gamma / sqrt(var+eps)
        stats1_ref[0:1, :] = scale
        stats1_ref[1:2, :] = bn1_ref[2:3, :] - mu * scale     # beta - mu*scale
        stats2_ref[...] = jnp.zeros_like(stats2_ref)

    @pl.when(p == 1)
    def _phase1():
        h = h_ref[pl.ds(row, tn), :]
        hn = h * stats1_ref[0:1, :] + stats1_ref[1:2, :]      # BN1 (batch stats)
        hn = jnp.maximum(hn, 0.0).astype(jnp.bfloat16)        # ReLU, bf16 for MXU
        z = lax.dot_general(hn, w2_ref[...], (((1,), (1,)), ((), ())),
                            preferred_element_type=jnp.float32)
        z = z + bn2_ref[0:1, :]                               # Linear2 bias
        z_ref[pl.ds(row, tn), :] = z
        stats2_ref[0:1, :] = stats2_ref[0:1, :] + jnp.sum(z, axis=0, keepdims=True)
        stats2_ref[1:2, :] = stats2_ref[1:2, :] + jnp.sum(z * z, axis=0, keepdims=True)

    # ---------------- phase 2: BN2 + lane-dense store ------------------
    @pl.when((p == 2) & (i == 0))
    def _finalize_stats2():
        mu = stats2_ref[0:1, :] * inv_n
        var = stats2_ref[1:2, :] * inv_n - mu * mu
        scale = bn2_ref[1:2, :] * lax.rsqrt(var + BN_EPS)
        stats2_ref[0:1, :] = scale
        stats2_ref[1:2, :] = bn2_ref[2:3, :] - mu * scale

    @pl.when(p == 2)
    def _phase2():
        z = z_ref[pl.ds(row, tn), :]
        o_ref[...] = (z * stats2_ref[0:1, :] + stats2_ref[1:2, :]).astype(o_ref.dtype)


# --------------------------------------------------------------------------
# Parameter packing (done ONCE, not per forward call)
# --------------------------------------------------------------------------
def _round_up(x, m):
    return ((x + m - 1) // m) * m


def pack_params(params):
    """Pad weights to lane-dense (multiple-of-128) shapes, cast matmul weights
    to bf16, and pack [bias, gamma, beta] into one (8, C) array per BN layer."""
    dim_in = params["w1"].shape[1]
    feat_dim = params["w2"].shape[0]
    dim_p = _round_up(dim_in, 128)
    feat_p = _round_up(feat_dim, 128)

    def pad2(w, r, c):
        return jnp.pad(w, ((0, r - w.shape[0]), (0, c - w.shape[1])))

    def bn_rows(b, g, be, cp):
        rows = jnp.zeros((8, cp), jnp.float32)
        rows = rows.at[0, : b.shape[0]].set(b)     # row 0: linear bias
        rows = rows.at[1, : g.shape[0]].set(g)     # row 1: BN gamma
        rows = rows.at[2, : be.shape[0]].set(be)   # row 2: BN beta
        return rows

    return {
        "w1": pad2(params["w1"], dim_p, dim_p).astype(jnp.bfloat16),
        "w2": pad2(params["w2"], feat_p, dim_p).astype(jnp.bfloat16),
        "bn1": bn_rows(params["b1"], params["g1"], params["be1"], dim_p),
        "bn2": bn_rows(params["b2"], params["g2"], params["be2"], feat_p),
        "dim_in": dim_in, "feat_dim": feat_dim, "dim_p": dim_p, "feat_p": feat_p,
    }


# --------------------------------------------------------------------------
# Wrapper
# --------------------------------------------------------------------------
def contrastive_head(x, packed):
    """x: (N, dim_in) float32. packed: output of pack_params (done once)."""
    n, dim_in = x.shape
    assert dim_in == packed["dim_in"]
    dim_p, feat_p, feat_dim = packed["dim_p"], packed["feat_p"], packed["feat_dim"]

    # Lane-dense input features (no-op when dim_in is already a multiple of 128).
    x_p = x if dim_p == dim_in else jnp.pad(x, ((0, 0), (0, dim_p - dim_in)))

    # Batch tile: multiple of 8 sublanes; whole batch if N is not 8-aligned.
    if n % 8 == 0:
        tn = next(t for t in (512, 256, 128, 64, 32, 16, 8) if n % t == 0)
    else:
        tn = n
    nt = max(n // tn, 1)
    grid = (3, nt)

    # x is only consumed in phase 0; keep the last phase-0 block resident after.
    x_spec = pl.BlockSpec((tn, dim_p), lambda p, i: (jnp.where(p == 0, i, nt - 1), 0))
    w1_spec = pl.BlockSpec((dim_p, dim_p), lambda p, i: (0, 0))      # resident
    bn1_spec = pl.BlockSpec((8, dim_p), lambda p, i: (0, 0))         # resident
    w2_spec = pl.BlockSpec((feat_p, dim_p), lambda p, i: (0, 0))     # resident
    bn2_spec = pl.BlockSpec((8, feat_p), lambda p, i: (0, 0))        # resident
    # Output is only produced in phase 2; hold block 0 until then so every
    # HBM writeback carries real data.
    o_spec = pl.BlockSpec((tn, feat_p), lambda p, i: (jnp.where(p == 2, i, 0), 0))

    # TODO(synk): for large N*dim_in the f32 h staging exceeds the v7x 64 MiB
    # VMEM budget -- stage h in HBM (memory_space=pl.ANY + make_async_copy) or
    # in bf16 instead of VMEM f32.
    scratch = [
        pltpu.VMEM((n, dim_p), jnp.float32),    # h (pre-BN1) staged across phases
        pltpu.VMEM((n, feat_p), jnp.float32),   # z (pre-BN2) staged across phases
        pltpu.VMEM((8, dim_p), jnp.float32),    # BN1 sum/sumsq -> scale/shift
        pltpu.VMEM((8, feat_p), jnp.float32),   # BN2 sum/sumsq -> scale/shift
    ]

    # Explicit VMEM budget (v7x-aware: don't rely on the scoped default).
    resident = (dim_p * dim_p + feat_p * dim_p) * 2 + (8 * dim_p + 8 * feat_p) * 4
    blocks = (tn * dim_p + tn * feat_p) * 4
    scratch_bytes = (n * dim_p + n * feat_p + 8 * dim_p + 8 * feat_p) * 4
    need = 2 * (resident + blocks) + scratch_bytes
    vmem_limit = min(max(int(need * 1.5) + (2 << 20), 16 << 20), 128 << 20)

    cost = pl.CostEstimate(
        flops=2 * n * dim_p * dim_p + 2 * n * dim_p * feat_p,
        transcendentals=2 * (dim_p + feat_p),
        bytes_accessed=(x_p.size * 4 + packed["w1"].size * 2 + packed["w2"].size * 2
                        + packed["bn1"].size * 4 + packed["bn2"].size * 4
                        + n * feat_p * 4),
    )

    out_p = pl.pallas_call(
        functools.partial(_contrastive_head_kernel, n),
        out_shape=jax.ShapeDtypeStruct((n, feat_p), x.dtype),
        grid_spec=pltpu.PrefetchScalarGridSpec(
            num_scalar_prefetch=0,
            grid=grid,
            in_specs=[x_spec, w1_spec, bn1_spec, w2_spec, bn2_spec],
            out_specs=o_spec,
            scratch_shapes=scratch),
        compiler_params=pltpu.CompilerParams(
            # TODO(synk): on v7x, shard the batch-tile axis over both
            # TensorCores with per-core partial BN sums combined via CMEM or a
            # tiny second pallas_call; with shared-scratch BN stats both axes
            # must stay "arbitrary" here.
            dimension_semantics=("arbitrary", "arbitrary"),
            vmem_limit_bytes=vmem_limit),
        cost_estimate=cost,
    )(x_p, packed["w1"], packed["bn1"], packed["w2"], packed["bn2"])

    return out_p[:, :feat_dim]


# --------------------------------------------------------------------------
# Init (mimics c2_xavier_fill: kaiming_uniform a=1 -> bound=sqrt(3/fan_in), bias=0)
# --------------------------------------------------------------------------
def init_params(key, dim_in, feat_dim):
    k1, k2 = jax.random.split(key)
    bound = (3.0 / dim_in) ** 0.5
    return {
        "w1": jax.random.uniform(k1, (dim_in, dim_in), jnp.float32, -bound, bound),
        "b1": jnp.zeros((dim_in,), jnp.float32),
        "g1": jnp.ones((dim_in,), jnp.float32),
        "be1": jnp.zeros((dim_in,), jnp.float32),
        "w2": jax.random.uniform(k2, (feat_dim, dim_in), jnp.float32, -bound, bound),
        "b2": jnp.zeros((feat_dim,), jnp.float32),
        "g2": jnp.ones((feat_dim,), jnp.float32),
        "be2": jnp.zeros((feat_dim,), jnp.float32),
    }


def _reference(x, p):
    """Pure-JAX reference of the PyTorch forward (training-mode BN). Matmul
    inputs are cast to bf16 with f32 accumulation to mirror the MXU path."""
    w1 = p["w1"].astype(jnp.bfloat16)
    w2 = p["w2"].astype(jnp.bfloat16)
    h = jnp.dot(x.astype(jnp.bfloat16), w1.T, preferred_element_type=jnp.float32) + p["b1"]
    mu = h.mean(0); var = (h * h).mean(0) - mu * mu
    h = (h - mu) * lax.rsqrt(var + BN_EPS) * p["g1"] + p["be1"]
    h = jnp.maximum(h, 0.0)
    z = jnp.dot(h.astype(jnp.bfloat16), w2.T, preferred_element_type=jnp.float32) + p["b2"]
    mu2 = z.mean(0); var2 = (z * z).mean(0) - mu2 * mu2
    return (z - mu2) * lax.rsqrt(var2 + BN_EPS) * p["g2"] + p["be2"]


if __name__ == "__main__":
    N, DIM_IN, FEAT_DIM = 8, 32, 16
    key = jax.random.PRNGKey(0)
    kx, kp = jax.random.split(key)
    x = jax.random.normal(kx, (N, DIM_IN), jnp.float32)
    params = init_params(kp, DIM_IN, FEAT_DIM)
    packed = pack_params(params)          # one-time: pad, pack BN rows, cast bf16

    out = contrastive_head(x, packed)
    out = jax.block_until_ready(out)

    ref = _reference(x, params)
    assert out.shape == (N, FEAT_DIM)
    assert jnp.allclose(out, ref, atol=5e-3, rtol=5e-3), "mismatch vs reference"
    print("KERNEL_OK")
</pallas_src>

<mosaic_0001>
module attributes {stable_mosaic.version = 11 : i64} {
  func.func @_contrastive_head_kernel(%arg0: i32, %arg1: i32, %arg2: memref<8x128xf32, #tpu.memory_space<vmem>>, %arg3: memref<128x128xbf16, #tpu.memory_space<vmem>>, %arg4: memref<8x128xf32, #tpu.memory_space<vmem>>, %arg5: memref<128x128xbf16, #tpu.memory_space<vmem>>, %arg6: memref<8x128xf32, #tpu.memory_space<vmem>>, %arg7: memref<8x128xf32, #tpu.memory_space<vmem>>, %arg8: memref<8x128xf32, #tpu.memory_space<vmem>>, %arg9: memref<8x128xf32, #tpu.memory_space<vmem>>, %arg10: memref<8x128xf32, #tpu.memory_space<vmem>>, %arg11: memref<8x128xf32, #tpu.memory_space<vmem>>) attributes {dimension_semantics = [#tpu.dimension_semantics<arbitrary>, #tpu.dimension_semantics<arbitrary>], iteration_bounds = array<i64: 3, 1>, scalar_prefetch = 0 : i64, scratch_operands = 4 : i64, tpu.core_type = #tpu.core_type<tc>, window_params = [{transform_indices = @transform_0, window_bounds = array<i64: 8, 128>}, {pipeline_mode = #tpu.pipeline_mode<synchronous>, transform_indices = @transform_1, window_bounds = array<i64: 128, 128>}, {pipeline_mode = #tpu.pipeline_mode<synchronous>, transform_indices = @transform_2, window_bounds = array<i64: 8, 128>}, {pipeline_mode = #tpu.pipeline_mode<synchronous>, transform_indices = @transform_3, window_bounds = array<i64: 128, 128>}, {pipeline_mode = #tpu.pipeline_mode<synchronous>, transform_indices = @transform_4, window_bounds = array<i64: 8, 128>}, {transform_indices = @transform_5, window_bounds = array<i64: 8, 128>}]} {
    %c8_i32 = arith.constant 8 : i32
    %0 = arith.muli %arg1, %c8_i32 : i32
    %1 = tpu.assume_multiple %0, 8 : i32
    %c0_i32 = arith.constant 0 : i32
    %2 = arith.cmpi eq, %arg0, %c0_i32 : i32
    %c0_i32_0 = arith.constant 0 : i32
    %3 = arith.cmpi eq, %arg1, %c0_i32_0 : i32
    %4 = arith.andi %2, %3 : i1
    %5 = arith.extui %4 : i1 to i32
    %c0_i32_1 = arith.constant 0 : i32
    %6 = arith.cmpi ne, %5, %c0_i32_1 : i32
    scf.if %6 {
      %cst = arith.constant 0.000000e+00 : f32
      %26 = vector.broadcast %cst : f32 to vector<8x128xf32>
      %c0 = arith.constant 0 : index
      %c0_12 = arith.constant 0 : index
      %27 = vector.load %arg10[%c0, %c0_12] : memref<8x128xf32, #tpu.memory_space<vmem>>, vector<8x128xf32>
      tpu.vector_store %arg10[%c0, %c0_12], %26 {strides = array<i32>} : memref<8x128xf32, #tpu.memory_space<vmem>>, vector<8x128xf32>,
    } else {
    }
    %c0_i32_2 = arith.constant 0 : i32
    %7 = arith.cmpi eq, %arg0, %c0_i32_2 : i32
    %8 = arith.extui %7 : i1 to i32
    %c0_i32_3 = arith.constant 0 : i32
    %9 = arith.cmpi ne, %8, %c0_i32_3 : i32
    scf.if %9 {
      %c0 = arith.constant 0 : index
      %c0_12 = arith.constant 0 : index
      %26 = vector.load %arg2[%c0, %c0_12] : memref<8x128xf32, #tpu.memory_space<vmem>>, vector<8x128xf32>
      %27 = arith.truncf %26 : vector<8x128xf32> to vector<8x128xbf16>
      %c0_13 = arith.constant 0 : index
      %c0_14 = arith.constant 0 : index
      %28 = vector.load %arg3[%c0_13, %c0_14] : memref<128x128xbf16, #tpu.memory_space<vmem>>, vector<128x128xbf16>
      %cst = arith.constant dense<0.000000e+00> : vector<8x128xf32>
      %29 = tpu.matmul %27, %28, %cst {dimension_numbers = #tpu.dot_dimension_numbers<[1], [1], [0], [0], [0, 0, 1, 0], [], []>} : vector<8x128xbf16>, vector<128x128xbf16>, vector<8x128xf32> -> vector<8x128xf32>
      %c0_15 = arith.constant 0 : index
      %c0_16 = arith.constant 0 : index
      %30 = vector.load %arg4[%c0_15, %c0_16] : memref<8x128xf32, #tpu.memory_space<vmem>>, vector<1x128xf32>
      %31 = vector.broadcast %30 : vector<1x128xf32> to vector<8x128xf32>
      %32 = arith.addf %29, %31 : vector<8x128xf32>
      %33 = arith.index_cast %1 : i32 to index
      %c0_17 = arith.constant 0 : index
      %34 = vector.load %arg8[%33, %c0_17] : memref<8x128xf32, #tpu.memory_space<vmem>>, vector<8x128xf32>
      tpu.vector_store %arg8[%33, %c0_17], %32 {strides = array<i32>} : memref<8x128xf32, #tpu.memory_space<vmem>>, vector<8x128xf32>,
      %c0_18 = arith.constant 0 : index
      %c0_19 = arith.constant 0 : index
      %35 = vector.load %arg10[%c0_18, %c0_19] : memref<8x128xf32, #tpu.memory_space<vmem>>, vector<1x128xf32>
      %cst_20 = arith.constant dense<0.000000e+00> : vector<128xf32>
      %36 = vector.multi_reduction <add>, %32, %cst_20 [0] : vector<8x128xf32> to vector<128xf32>
      %37 = vector.shape_cast %36 : vector<128xf32> to vector<1x128xf32>
      %38 = arith.addf %35, %37 : vector<1x128xf32>
      %c0_21 = arith.constant 0 : index
      %c0_22 = arith.constant 0 : index
      %39 = vector.load %arg10[%c0_21, %c0_22] : memref<8x128xf32, #tpu.memory_space<vmem>>, vector<1x128xf32>
      tpu.vector_store %arg10[%c0_21, %c0_22], %38 {strides = array<i32>} : memref<8x128xf32, #tpu.memory_space<vmem>>, vector<1x128xf32>,
      %c1 = arith.constant 1 : index
      %c0_23 = arith.constant 0 : index
      %40 = vector.load %arg10[%c1, %c0_23] : memref<8x128xf32, #tpu.memory_space<vmem>>, vector<1x128xf32>
      %41 = arith.mulf %32, %32 : vector<8x128xf32>
      %cst_24 = arith.constant dense<0.000000e+00> : vector<128xf32>
      %42 = vector.multi_reduction <add>, %41, %cst_24 [0] : vector<8x128xf32> to vector<128xf32>
      %43 = vector.shape_cast %42 : vector<128xf32> to vector<1x128xf32>
      %44 = arith.addf %40, %43 : vector<1x128xf32>
      %c1_25 = arith.constant 1 : index
      %c0_26 = arith.constant 0 : index
      %45 = vector.load %arg10[%c1_25, %c0_26] : memref<8x128xf32, #tpu.memory_space<vmem>>, vector<1x128xf32>
      tpu.vector_store %arg10[%c1_25, %c0_26], %44 {strides = array<i32>} : memref<8x128xf32, #tpu.memory_space<vmem>>, vector<1x128xf32>,
    } else {
    }
    %c1_i32 = arith.constant 1 : i32
    %10 = arith.cmpi eq, %arg0, %c1_i32 : i32
    %c0_i32_4 = arith.constant 0 : i32
    %11 = arith.cmpi eq, %arg1, %c0_i32_4 : i32
    %12 = arith.andi %10, %11 : i1
    %13 = arith.extui %12 : i1 to i32
    %c0_i32_5 = arith.constant 0 : i32
    %14 = arith.cmpi ne, %13, %c0_i32_5 : i32
    scf.if %14 {
      %c0 = arith.constant 0 : index
      %c0_12 = arith.constant 0 : index
      %26 = vector.load %arg10[%c0, %c0_12] : memref<8x128xf32, #tpu.memory_space<vmem>>, vector<1x128xf32>
      %cst = arith.constant 1.250000e-01 : f32
      %27 = vector.broadcast %cst : f32 to vector<1x128xf32>
      %28 = arith.mulf %26, %27 : vector<1x128xf32>
      %c1 = arith.constant 1 : index
      %c0_13 = arith.constant 0 : index
      %29 = vector.load %arg10[%c1, %c0_13] : memref<8x128xf32, #tpu.memory_space<vmem>>, vector<1x128xf32>
      %cst_14 = arith.constant 1.250000e-01 : f32
      %30 = vector.broadcast %cst_14 : f32 to vector<1x128xf32>
      %31 = arith.mulf %29, %30 : vector<1x128xf32>
      %32 = arith.mulf %28, %28 : vector<1x128xf32>
      %33 = arith.subf %31, %32 : vector<1x128xf32>
      %c1_15 = arith.constant 1 : index
      %c0_16 = arith.constant 0 : index
      %34 = vector.load %arg4[%c1_15, %c0_16] : memref<8x128xf32, #tpu.memory_space<vmem>>, vector<1x128xf32>
      %cst_17 = arith.constant 9.99999974E-6 : f32
      %35 = vector.broadcast %cst_17 : f32 to vector<1x128xf32>
      %36 = arith.addf %33, %35 : vector<1x128xf32>
      %37 = math.rsqrt %36 : vector<1x128xf32>
      %38 = arith.mulf %34, %37 : vector<1x128xf32>
      %c0_18 = arith.constant 0 : index
      %c0_19 = arith.constant 0 : index
      %39 = vector.load %arg10[%c0_18, %c0_19] : memref<8x128xf32, #tpu.memory_space<vmem>>, vector<1x128xf32>
      tpu.vector_store %arg10[%c0_18, %c0_19], %38 {strides = array<i32>} : memref<8x128xf32, #tpu.memory_space<vmem>>, vector<1x128xf32>,
      %c2 = arith.constant 2 : index
      %c0_20 = arith.constant 0 : index
      %40 = vector.load %arg4[%c2, %c0_20] : memref<8x128xf32, #tpu.memory_space<vmem>>, vector<1x128xf32>
      %41 = arith.mulf %28, %38 : vector<1x128xf32>
      %42 = arith.subf %40, %41 : vector<1x128xf32>
      %c1_21 = arith.constant 1 : index
      %c0_22 = arith.constant 0 : index
      %43 = vector.load %arg10[%c1_21, %c0_22] : memref<8x128xf32, #tpu.memory_space<vmem>>, vector<1x128xf32>
      tpu.vector_store %arg10[%c1_21, %c0_22], %42 {strides = array<i32>} : memref<8x128xf32, #tpu.memory_space<vmem>>, vector<1x128xf32>,
      %cst_23 = arith.constant 0.000000e+00 : f32
      %44 = vector.broadcast %cst_23 : f32 to vector<8x128xf32>
      %c0_24 = arith.constant 0 : index
      %c0_25 = arith.constant 0 : index
      %45 = vector.load %arg11[%c0_24, %c0_25] : memref<8x128xf32, #tpu.memory_space<vmem>>, vector<8x128xf32>
      tpu.vector_store %arg11[%c0_24, %c0_25], %44 {strides = array<i32>} : memref<8x128xf32, #tpu.memory_space<vmem>>, vector<8x128xf32>,
    } else {
    }
    %c1_i32_6 = arith.constant 1 : i32
    %15 = arith.cmpi eq, %arg0, %c1_i32_6 : i32
    %16 = arith.extui %15 : i1 to i32
    %c0_i32_7 = arith.constant 0 : i32
    %17 = arith.cmpi ne, %16, %c0_i32_7 : i32
    scf.if %17 {
      %26 = arith.index_cast %1 : i32 to index
      %c0 = arith.constant 0 : index
      %27 = vector.load %arg8[%26, %c0] : memref<8x128xf32, #tpu.memory_space<vmem>>, vector<8x128xf32>
      %c0_12 = arith.constant 0 : index
      %c0_13 = arith.constant 0 : index
      %28 = vector.load %arg10[%c0_12, %c0_13] : memref<8x128xf32, #tpu.memory_space<vmem>>, vector<1x128xf32>
      %29 = vector.broadcast %28 : vector<1x128xf32> to vector<8x128xf32>
      %30 = arith.mulf %27, %29 : vector<8x128xf32>
      %c1 = arith.constant 1 : index
      %c0_14 = arith.constant 0 : index
      %31 = vector.load %arg10[%c1, %c0_14] : memref<8x128xf32, #tpu.memory_space<vmem>>, vector<1x128xf32>
      %32 = vector.broadcast %31 : vector<1x128xf32> to vector<8x128xf32>
      %33 = arith.addf %30, %32 : vector<8x128xf32>
      %cst = arith.constant 0.000000e+00 : f32
      %34 = vector.broadcast %cst : f32 to vector<8x128xf32>
      %35 = arith.maximumf %33, %34 : vector<8x128xf32>
      %36 = arith.truncf %35 : vector<8x128xf32> to vector<8x128xbf16>
      %c0_15 = arith.constant 0 : index
      %c0_16 = arith.constant 0 : index
      %37 = vector.load %arg5[%c0_15, %c0_16] : memref<128x128xbf16, #tpu.memory_space<vmem>>, vector<128x128xbf16>
      %cst_17 = arith.constant dense<0.000000e+00> : vector<8x128xf32>
      %38 = tpu.matmul %36, %37, %cst_17 {dimension_numbers = #tpu.dot_dimension_numbers<[1], [1], [0], [0], [0, 0, 1, 0], [], []>} : vector<8x128xbf16>, vector<128x128xbf16>, vector<8x128xf32> -> vector<8x128xf32>
      %c0_18 = arith.constant 0 : index
      %c0_19 = arith.constant 0 : index
      %39 = vector.load %arg6[%c0_18, %c0_19] : memref<8x128xf32, #tpu.memory_space<vmem>>, vector<1x128xf32>
      %40 = vector.broadcast %39 : vector<1x128xf32> to vector<8x128xf32>
      %41 = arith.addf %38, %40 : vector<8x128xf32>
      %42 = arith.index_cast %1 : i32 to index
      %c0_20 = arith.constant 0 : index
      %43 = vector.load %arg9[%42, %c0_20] : memref<8x128xf32, #tpu.memory_space<vmem>>, vector<8x128xf32>
      tpu.vector_store %arg9[%42, %c0_20], %41 {strides = array<i32>} : memref<8x128xf32, #tpu.memory_space<vmem>>, vector<8x128xf32>,
      %c0_21 = arith.constant 0 : index
      %c0_22 = arith.constant 0 : index
      %44 = vector.load %arg11[%c0_21, %c0_22] : memref<8x128xf32, #tpu.memory_space<vmem>>, vector<1x128xf32>
      %cst_23 = arith.constant dense<0.000000e+00> : vector<128xf32>
      %45 = vector.multi_reduction <add>, %41, %cst_23 [0] : vector<8x128xf32> to vector<128xf32>
      %46 = vector.shape_cast %45 : vector<128xf32> to vector<1x128xf32>
      %47 = arith.addf %44, %46 : vector<1x128xf32>
      %c0_24 = arith.constant 0 : index
      %c0_25 = arith.constant 0 : index
      %48 = vector.load %arg11[%c0_24, %c0_25] : memref<8x128xf32, #tpu.memory_space<vmem>>, vector<1x128xf32>
      tpu.vector_store %arg11[%c0_24, %c0_25], %47 {strides = array<i32>} : memref<8x128xf32, #tpu.memory_space<vmem>>, vector<1x128xf32>,
      %c1_26 = arith.constant 1 : index
      %c0_27 = arith.constant 0 : index
      %49 = vector.load %arg11[%c1_26, %c0_27] : memref<8x128xf32, #tpu.memory_space<vmem>>, vector<1x128xf32>
      %50 = arith.mulf %41, %41 : vector<8x128xf32>
      %cst_28 = arith.constant dense<0.000000e+00> : vector<128xf32>
      %51 = vector.multi_reduction <add>, %50, %cst_28 [0] : vector<8x128xf32> to vector<128xf32>
      %52 = vector.shape_cast %51 : vector<128xf32> to vector<1x128xf32>
      %53 = arith.addf %49, %52 : vector<1x128xf32>
      %c1_29 = arith.constant 1 : index
      %c0_30 = arith.constant 0 : index
      %54 = vector.load %arg11[%c1_29, %c0_30] : memref<8x128xf32, #tpu.memory_space<vmem>>, vector<1x128xf32>
      tpu.vector_store %arg11[%c1_29, %c0_30], %53 {strides = array<i32>} : memref<8x128xf32, #tpu.memory_space<vmem>>, vector<1x128xf32>,
    } else {
    }
    %c2_i32 = arith.constant 2 : i32
    %18 = arith.cmpi eq, %arg0, %c2_i32 : i32
    %c0_i32_8 = arith.constant 0 : i32
    %19 = arith.cmpi eq, %arg1, %c0_i32_8 : i32
    %20 = arith.andi %18, %19 : i1
    %21 = arith.extui %20 : i1 to i32
    %c0_i32_9 = arith.constant 0 : i32
    %22 = arith.cmpi ne, %21, %c0_i32_9 : i32
    scf.if %22 {
      %c0 = arith.constant 0 : index
      %c0_12 = arith.constant 0 : index
      %26 = vector.load %arg11[%c0, %c0_12] : memref<8x128xf32, #tpu.memory_space<vmem>>, vector<1x128xf32>
      %cst = arith.constant 1.250000e-01 : f32
      %27 = vector.broadcast %cst : f32 to vector<1x128xf32>
      %28 = arith.mulf %26, %27 : vector<1x128xf32>
      %c1 = arith.constant 1 : index
      %c0_13 = arith.constant 0 : index
      %29 = vector.load %arg11[%c1, %c0_13] : memref<8x128xf32, #tpu.memory_space<vmem>>, vector<1x128xf32>
      %cst_14 = arith.constant 1.250000e-01 : f32
      %30 = vector.broadcast %cst_14 : f32 to vector<1x128xf32>
      %31 = arith.mulf %29, %30 : vector<1x128xf32>
      %32 = arith.mulf %28, %28 : vector<1x128xf32>
      %33 = arith.subf %31, %32 : vector<1x128xf32>
      %c1_15 = arith.constant 1 : index
      %c0_16 = arith.constant 0 : index
      %34 = vector.load %arg6[%c1_15, %c0_16] : memref<8x128xf32, #tpu.memory_space<vmem>>, vector<1x128xf32>
      %cst_17 = arith.constant 9.99999974E-6 : f32
      %35 = vector.broadcast %cst_17 : f32 to vector<1x128xf32>
      %36 = arith.addf %33, %35 : vector<1x128xf32>
      %37 = math.rsqrt %36 : vector<1x128xf32>
      %38 = arith.mulf %34, %37 : vector<1x128xf32>
      %c0_18 = arith.constant 0 : index
      %c0_19 = arith.constant 0 : index
      %39 = vector.load %arg11[%c0_18, %c0_19] : memref<8x128xf32, #tpu.memory_space<vmem>>, vector<1x128xf32>
      tpu.vector_store %arg11[%c0_18, %c0_19], %38 {strides = array<i32>} : memref<8x128xf32, #tpu.memory_space<vmem>>, vector<1x128xf32>,
      %c2 = arith.constant 2 : index
      %c0_20 = arith.constant 0 : index
      %40 = vector.load %arg6[%c2, %c0_20] : memref<8x128xf32, #tpu.memory_space<vmem>>, vector<1x128xf32>
      %41 = arith.mulf %28, %38 : vector<1x128xf32>
      %42 = arith.subf %40, %41 : vector<1x128xf32>
      %c1_21 = arith.constant 1 : index
      %c0_22 = arith.constant 0 : index
      %43 = vector.load %arg11[%c1_21, %c0_22] : memref<8x128xf32, #tpu.memory_space<vmem>>, vector<1x128xf32>
      tpu.vector_store %arg11[%c1_21, %c0_22], %42 {strides = array<i32>} : memref<8x128xf32, #tpu.memory_space<vmem>>, vector<1x128xf32>,
    } else {
    }
    %c2_i32_10 = arith.constant 2 : i32
    %23 = arith.cmpi eq, %arg0, %c2_i32_10 : i32
    %24 = arith.extui %23 : i1 to i32
    %c0_i32_11 = arith.constant 0 : i32
    %25 = arith.cmpi ne, %24, %c0_i32_11 : i32
    scf.if %25 {
      %26 = arith.index_cast %1 : i32 to index
      %c0 = arith.constant 0 : index
      %27 = vector.load %arg9[%26, %c0] : memref<8x128xf32, #tpu.memory_space<vmem>>, vector<8x128xf32>
      %c0_12 = arith.constant 0 : index
      %c0_13 = arith.constant 0 : index
      %28 = vector.load %arg11[%c0_12, %c0_13] : memref<8x128xf32, #tpu.memory_space<vmem>>, vector<1x128xf32>
      %29 = vector.broadcast %28 : vector<1x128xf32> to vector<8x128xf32>
      %30 = arith.mulf %27, %29 : vector<8x128xf32>
      %c1 = arith.constant 1 : index
      %c0_14 = arith.constant 0 : index
      %31 = vector.load %arg11[%c1, %c0_14] : memref<8x128xf32, #tpu.memory_space<vmem>>, vector<1x128xf32>
      %32 = vector.broadcast %31 : vector<1x128xf32> to vector<8x128xf32>
      %33 = arith.addf %30, %32 : vector<8x128xf32>
      %c0_15 = arith.constant 0 : index
      %c0_16 = arith.constant 0 : index
      %34 = vector.load %arg7[%c0_15, %c0_16] : memref<8x128xf32, #tpu.memory_space<vmem>>, vector<8x128xf32>
      tpu.vector_store %arg7[%c0_15, %c0_16], %33 {strides = array<i32>} : memref<8x128xf32, #tpu.memory_space<vmem>>, vector<8x128xf32>,
    } else {
    }
    return
  }
  func.func @transform_0(%arg0: i32, %arg1: i32) -> (i32, i32) {
    %c0_i32 = arith.constant 0 : i32
    %0 = arith.cmpi eq, %arg0, %c0_i32 : i32
    %c0_i32_0 = arith.constant 0 : i32
    %1 = arith.select %0, %arg1, %c0_i32_0 : i32
    %c0_i32_1 = arith.constant 0 : i32
    %c0_i32_2 = arith.constant 0 : i32
    return %1, %c0_i32_1 : i32, i32
  }
  func.func @transform_1(%arg0: i32, %arg1: i32) -> (i32, i32) {
    %c0_i32 = arith.constant 0 : i32
    %c0_i32_0 = arith.constant 0 : i32
    %c0_i32_1 = arith.constant 0 : i32
    return %c0_i32, %c0_i32_0 : i32, i32
  }
  func.func @transform_2(%arg0: i32, %arg1: i32) -> (i32, i32) {
    %c0_i32 = arith.constant 0 : i32
    %c0_i32_0 = arith.constant 0 : i32
    %c0_i32_1 = arith.constant 0 : i32
    return %c0_i32, %c0_i32_0 : i32, i32
  }
  func.func @transform_3(%arg0: i32, %arg1: i32) -> (i32, i32) {
    %c0_i32 = arith.constant 0 : i32
    %c0_i32_0 = arith.constant 0 : i32
    %c0_i32_1 = arith.constant 0 : i32
    return %c0_i32, %c0_i32_0 : i32, i32
  }
  func.func @transform_4(%arg0: i32, %arg1: i32) -> (i32, i32) {
    %c0_i32 = arith.constant 0 : i32
    %c0_i32_0 = arith.constant 0 : i32
    %c0_i32_1 = arith.constant 0 : i32
    return %c0_i32, %c0_i32_0 : i32, i32
  }
  func.func @transform_5(%arg0: i32, %arg1: i32) -> (i32, i32) {
    %c2_i32 = arith.constant 2 : i32
    %0 = arith.cmpi eq, %arg0, %c2_i32 : i32
    %c0_i32 = arith.constant 0 : i32
    %1 = arith.select %0, %arg1, %c0_i32 : i32
    %c0_i32_0 = arith.constant 0 : i32
    %c0_i32_1 = arith.constant 0 : i32
    return %1, %c0_i32_0 : i32, i32
  }
}

</mosaic_0001>

<bundles_post_ra>
// kernel: tpu_custom_call.1
= control target key start
LH: loop header
LB: loop body
LE: loop exit
PB: predicated region body
PF: predicated region fallthrough
CT: control target
= control target key end

     0   :  { %10 = vsyncpa [#allocation7], 0  ;;  %s1409_s0 = inlined_call_operand.hbm [shape: f32[8,128], index: 0, kind: input, shape index: {}]   ;;  %s1410_s1 = inlined_call_operand.hbm [shape: bf16[128,128], index: 1, kind: input, shape index: {}]   ;;  %s1411_s2 = inlined_call_operand.hbm [shape: f32[8,128], index: 2, kind: input, shape index: {}]   ;;  %s1412_s3 = inlined_call_operand.hbm [shape: bf16[128,128], index: 3, kind: input, shape index: {}]   ;;  %s1413_s4 = inlined_call_operand.hbm [shape: f32[8,128], index: 4, kind: input, shape index: {}]   ;;  %s1414_s5 = inlined_call_operand.hbm [shape: f32[8,128], index: 5, kind: output, shape index: {}]  }
   0x1   :  { %12 = vsyncpa [#allocation7 + $0x1], 0 }
   0x2   :  { %13 = vsyncpa [#allocation10], 0 }
   0x3   :  { %14 = vsyncpa [#allocation13], 0 }
   0x4   :  { %15 = vsyncpa [#allocation8], 0 }
   0x5   :  { %17 = vsyncpa [#allocation8 + $0x1], 0  ;;  %s1275_s18 = smov 0   ;;  %s1277_s19 = smov 0  }
   0x6   :  { %s1279_s20 = smov 0  }
   0x7 LB: > { %s812_s21 = sadd.s32 4294967295, %s1229_s20   ;;  %s813_s22 = sadd.s32 4294967294, %s1229_s20   ;;  %s1229_s20 = sphi %s1279_s20, %s23_s20   ;;  %s1225_s19 = sphi %s1277_s19, %s1424_s19   ;;  %s1221_s18 = sphi %s1275_s18, %s1423_s18  }
   0x8   : > { %s35_s23 = sadd.s32 1, %s1225_s19  ;;  %p814_p0 = scmp.ge.s32.totalorder %s1229_s20, 1 }
   0x9   : > { %p37_p1 = scmp.ge.s32.totalorder %s35_s23, 3  ;;  %p184_p2 = scmp.lt.s32.totalorder %s1229_s20, 4 }
   0xa   : > { %p1297_p3 = scmp.eq.s32.totalorder %s812_s21, 0  ;;  %s1231_s26 = smov [#allocation9]  }
   0xb   : > { %s1426_s23 = smov (%p37_p1, %s35_s23), 0  ;;  %p1303_p4 = pnand %p814_p0, %p184_p2 }
   0xc   : > { %s1417_s24 = scalar_select %p1297_p3, 1, 0 }
   0xd   : > { %s196_s27 = sshll.u32 %s1231_s26, 4  ;;  %p944_p5 = pneg %p1303_p4  ;;  %s197_s27 = int_to_ptr.vmem [resolvable:$true] %s196_s27 }
   0xe   : > { %s1232_s29 = smov [#allocation12]   ;;  %s1048_s6 = scalar_lea.vmem %s197_s27, 1024 }
   0xf   : > { %p1311_p6 = pnand %p1297_p3, %p944_p5  ;;  %s220_s30 = sshll.u32 %s1232_s29, 4  ;;  %s221_s30 = int_to_ptr.vmem [resolvable:$true] %s220_s30 }
  0x10   : > { %p1049_p8 = scmp.ne.s32.totalorder %s197_s27, %s1048_s6  ;;  %p1056_p11 = scmp.lt.s32.totalorder %s197_s27, %s197_s27 }
  0x11   : > { %p1039_p7 = pneg %p1311_p6  ;;  %p1057_p12 = scmp.lt.s32.totalorder %s1048_s6, %s1048_s6 }
  0x13   : > { %p1051_p9 = pnand %p1049_p8, %p1039_p7  ;;  %p1058_p13 = por %p1057_p12, %p1056_p11 }
  0x15   : > { %p1052_p10 = pneg %p1051_p9 }
  0x17   : > { %p1059_p0 = pnand %p1058_p13, %p1052_p10 }
  0x19   : > { %1062 = shalt.err (!%p1059_p0)
}
  0x1a   : > { %s1233_s7 = smov 64   ;;  %s1234_s8 = smov 4  }
  0x1b   : > { %947 = dma.hbm_to_vmem [thread:$0]  (!%p1311_p6), %s1410_s1, 1024, %s197_s27, [#allocation10], %s1233_s7, %s1233_s7, %s1234_s8  }
  0x1c   : > { %s1235_s11 = smov [#allocation11]   ;;  %s1074_s13 = scalar_lea.vmem %s221_s30, 1024 }
  0x1d   : > { %s210_s12 = sshll.u32 %s1235_s11, 4  ;;  %p1075_p1 = scmp.ne.s32.totalorder %s221_s30, %s1074_s13  ;;  %s211_s12 = int_to_ptr.vmem [resolvable:$true] %s210_s12 }
  0x1e   : > { %p1082_p8 = scmp.lt.s32.totalorder %s221_s30, %s221_s30  ;;  %p1083_p9 = scmp.lt.s32.totalorder %s1074_s13, %s1074_s13 }
  0x1f   : > { %p1077_p2 = pnand %p1075_p1, %p1039_p7 }
  0x20   : > { %p1084_p10 = por %p1083_p9, %p1082_p8 }
  0x21   : > { %p1078_p5 = pneg %p1077_p2 }
  0x23   : > { %p1085_p11 = pnand %p1084_p10, %p1078_p5 }
  0x25   : > { %1088 = shalt.err (!%p1085_p11)
}
  0x26   : > { %953 = dma.hbm_to_vmem [thread:$0]  (!%p1311_p6), %s1412_s3, 1024, %s221_s30, [#allocation13], %s1233_s7, %s1233_s7, %s1234_s8  }
  0x27   : > { %s1100_s16 = scalar_lea.vmem %s211_s12, 128  ;;  %p1108_p1 = scmp.lt.s32.totalorder %s211_s12, %s211_s12 }
  0x28   : > { %p1101_p12 = scmp.ne.s32.totalorder %s211_s12, %s1100_s16  ;;  %p1109_p2 = scmp.lt.s32.totalorder %s1100_s16, %s1100_s16 }
  0x2a   : > { %p1103_p13 = pnand %p1101_p12, %p1039_p7  ;;  %p1110_p3 = por %p1109_p2, %p1108_p1 }
  0x2c   : > { %p1104_p0 = pneg %p1103_p13 }
  0x2e   : > { %p1111_p8 = pnand %p1110_p3, %p1104_p0 }
  0x30   : > { %1114 = shalt.err (!%p1111_p8)
}
  0x31   : > { %950 = dma.hbm_to_vmem [thread:$0]  (!%p1311_p6), %s1411_s2, 128, %s211_s12, [#allocation10]  }
  0x32   : > { %s1236_s27 = smov [#allocation14]   ;;  %p969_p5 = scmp.lt.s32.totalorder %s1229_s20, 3 }
  0x33   : > { %s234_s29 = sshll.u32 %s1236_s27, 4  ;;  %p970_p9 = scmp.eq.s32.totalorder %s1229_s20, 0  ;;  %s235_s29 = int_to_ptr.vmem [resolvable:$true] %s234_s29 }
  0x34   : > { %s1126_s30 = scalar_lea.vmem %s235_s29, 128  ;;  %p1134_p12 = scmp.lt.s32.totalorder %s235_s29, %s235_s29 }
  0x35   : > { %p1127_p10 = scmp.ne.s32.totalorder %s235_s29, %s1126_s30  ;;  %p1135_p13 = scmp.lt.s32.totalorder %s1126_s30, %s1126_s30 }
  0x37   : > { %p1129_p3 = pnand %p1127_p10, %p1039_p7  ;;  %p1136_p0 = por %p1135_p13, %p1134_p12 }
  0x39   : > { %p1130_p11 = pneg %p1129_p3 }
  0x3b   : > { %p1137_p1 = pnand %p1136_p0, %p1130_p11 }
  0x3d   : > { %1140 = shalt.err (!%p1137_p1)
}
  0x3e   : > { %956 = dma.hbm_to_vmem [thread:$0]  (!%p1311_p6), %s1413_s4, 128, %s235_s29, [#allocation13]  }
  0x3f   : > { %p1353_p2 = pnand %p970_p9, %p969_p5  ;;  %s1237_s9 = smov [#allocation6]  }
  0x40   : > { %s258_s10 = sshll.u32 %s1237_s9, 4  ;;  %s259_s10 = int_to_ptr.vmem [resolvable:$true] %s258_s10 }
  0x41   : > { %p1143_p7 = pneg %p1353_p2  ;;  %s1152_s11 = scalar_lea.vmem %s259_s10, 128 }
  0x42   : > { %p1153_p8 = scmp.ne.s32.totalorder %s259_s10, %s1152_s11  ;;  %s1159_s28 = scalar_lea.vmem %s259_s10, 256 }
  0x43   : > { %p1160_p11 = scmp.lt.s32.totalorder %s259_s10, %s259_s10  ;;  %p1161_p12 = scmp.lt.s32.totalorder %s1159_s28, %s1152_s11 }
  0x44   : > { %p1155_p10 = pnand %p1153_p8, %p1143_p7 }
  0x45   : > { %p1162_p13 = por %p1161_p12, %p1160_p11 }
  0x46   : > { %p1156_p3 = pneg %p1155_p10 }
  0x48   : > { %p1163_p6 = pnand %p1162_p13, %p1156_p3 }
  0x4a   : > { %1166 = shalt.err (!%p1163_p6)
}
  0x4b   : > { %960 = dma.hbm_to_vmem [thread:$0]  (!%p1353_p2), %s1409_s0, 128, %s259_s10, [#allocation7]  }
  0x4c   : > { %267 = sbr.rel (%p1303_p4) target bundleno = 755 (0x2f3), region = 40  ;;  %p1421_p5 = scmp.ne.s32.totalorder (!%p1303_p4), %s1417_s24, 0 }
  0x51   : > { %1204 = dma.done.wait (%p1421_p5), [#allocation7], 128  }
  0x52   : > { %1206 = vsyncadd (%p1421_p5), [#allocation7], 4294967168 }
  0x53   : > { %1208 = dma.done.wait (%p1421_p5), [#allocation10], 1152  }
  0x54   : > { %1210 = vsyncadd (%p1421_p5), [#allocation10], 4294966144 }
  0x55   : > { %1212 = dma.done.wait (%p1421_p5), [#allocation13], 1152  }
  0x56   : > { %1214 = vsyncadd (%p1421_p5), [#allocation13], 4294966144  ;;  %p322_p4 = scmp.eq.s32.totalorder %s1221_s18, 0 }
  0x57   : > { %v1238_v0 = vmov (%p322_p4), 0.0  }
  0x58   : > { %327 = sbr.rel (!%p322_p4) target bundleno = 93 (0x5d), region = 64  ;;  %328 = vst [vmem:[#allocation4] sm:$0xff] (%p322_p4), %v1238_v0 }
  0x5d PF: > { %p828_p9 = scmp.ne.s32.totalorder %s1221_s18, 0 }
  0x5f   : > { %331 = sbr.rel (%p828_p9) target bundleno = 377 (0x179), region = 68 }
  0x64   : > { %v1017_v1 = vld [vmem:[#allocation9 + $0x38] sm:$0xff]   ;;  %v1239_v2 = vmov 0.0   ;;  %vm1240_vm0 = vmmov 0   ;;  %v1018_v3 = vld [vmem:[#allocation9 + $0x30] sm:$0xff]   ;;  %v1019_v4 = vld [vmem:[#allocation9 + $0x28] sm:$0xff]  }
  0x65   : > { %880 = vmatprep.subr.bf16.mxu0 %v1239_v2  ;;  %896 = vmatprep.mubr.msk.bf16.mxu0 %vm1240_vm0, %v1239_v2  ;;  %v1020_v5 = vld [vmem:[#allocation9 + $0x20] sm:$0xff]   ;;  %v1021_v6 = vld [vmem:[#allocation9 + $0x18] sm:$0xff]   ;;  %v1022_v7 = vld [vmem:[#allocation9 + $0x10] sm:$0xff]  }
  0x66   : > { %881 = vmatpush3.bf16.xpose.msra.mxu0 %v1017_v1  ;;  %v1023_v8 = vld [vmem:[#allocation9 + $0x8] sm:$0xff]   ;;  %v1024_v9 = vld [vmem:[#allocation9] sm:$0xff]   ;;  %v332_v10 = vld [vmem:[#allocation6] sm:$0xff] }
  0x67   : > { %882 = vmatprep.subr.bf16.mxu0 %v1239_v2  ;;  %v333_v11 = vpack.c.bf16 %v332_v10, %v332_v10  ;;  %v829_v12 = vld [vmem:[#allocation11] ss:$0 sm:$0xff]  ;;  %v454_v31 = vld [vmem:[#allocation4 + $0x1] sm:$0x1] }
  0x68   : > { %v445_v28 = vld [vmem:[#allocation4] sm:$0x1] }
  0x6e   : > { %883 = vmatpush3.bf16.xpose.msra.mxu0 %v1018_v3 }
  0x6f   : > { %884 = vmatprep.subr.bf16.mxu0 %v1239_v2 }
  0x76   : > { %885 = vmatpush3.bf16.xpose.msra.mxu0 %v1019_v4 }
  0x77   : > { %886 = vmatprep.subr.bf16.mxu0 %v1239_v2 }
  0x7e   : > { %887 = vmatpush3.bf16.xpose.msra.mxu0 %v1020_v5 }
  0x7f   : > { %888 = vmatprep.subr.bf16.mxu0 %v1239_v2 }
  0x86   : > { %889 = vmatpush3.bf16.xpose.msra.mxu0 %v1021_v6 }
  0x87   : > { %890 = vmatprep.subr.bf16.mxu0 %v1239_v2 }
  0x8e   : > { %891 = vmatpush3.bf16.xpose.msra.mxu0 %v1022_v7 }
  0x8f   : > { %892 = vmatprep.subr.bf16.mxu0 %v1239_v2 }
  0x96   : > { %893 = vmatpush3.bf16.xpose.msra.mxu0 %v1023_v8 }
  0x97   : > { %894 = vmatprep.subr.bf16.mxu0 %v1239_v2 }
  0x9e   : > { %895 = vmatpush3.bf16.xpose.msra.mxu0 %v1024_v9 }
  0xa5   : > { %897 = vmatmul.mubr.bf16.vlgmr.msra.gmra.mxu0 %v333_v11 }
 0x165   : > { %v437_v13 = vpop.f32.mrf.mxu0 }
 0x166   : > { %v438_v14 = vadd.f32 %v829_v12, %v437_v13 }
 0x167   : > { %v898_v15 = vpop.f32.mrf.mxu0 }
 0x168   : > { %444 = vst [vmem:[#allocation2] sm:$0xff] %v438_v14  ;;  %v446_v16 = vrot.slane %v438_v14, 4  ;;  %v455_v17 = vmul.f32 %v438_v14, %v438_v14 }
 0x169   : > { %v440_v18 = vpop.f32.mrf.mxu0 }
 0x16a   : > { %v447_v19 = vadd.f32 %v446_v16, %v438_v14  ;;  %v456_v20 = vrot.slane %v455_v17, 4 }
 0x16b   : > { %v899_v21 = vpop.f32.mrf.mxu0 }
 0x16c   : > { %v448_v22 = vrot.slane %v447_v19, 2  ;;  %v457_v23 = vadd.f32 %v456_v20, %v455_v17 }
 0x16e   : > { %v449_v24 = vadd.f32 %v448_v22, %v447_v19  ;;  %v458_v25 = vrot.slane %v457_v23, 2 }
 0x170   : > { %v450_v26 = vrot.slane %v449_v24, 1  ;;  %v459_v27 = vadd.f32 %v458_v25, %v457_v23 }
 0x172   : > { %v451_v29 = vadd.f32 %v450_v26, %v449_v24  ;;  %v460_v30 = vrot.slane %v459_v27, 1 }
 0x174   : > { %v452_v32 = vadd.f32 %v451_v29, %v445_v28  ;;  %v461_v33 = vadd.f32 %v460_v30, %v459_v27 }
 0x176   : > { %453 = vst [vmem:[#allocation4] sm:$0x1] %v452_v32  ;;  %v462_v34 = vadd.f32 %v461_v33, %v454_v31 }
 0x178   : > { %463 = vst [vmem:[#allocation4 + $0x1] sm:$0x1] %v462_v34 }
 0x179 PF: > { %p464_p0 = scmp.eq.s32.totalorder %s1221_s18, 1 }
 0x17a   : > { %v1241_v39 = vmov (%p464_p0), 0.0   ;;  %v475_v43 = vld [vmem:[#allocation11 + $0x1] sm:$0x1] (%p464_p0)  ;;  %v480_v46 = vld [vmem:[#allocation11 + $0x2] sm:$0x1] (%p464_p0) }
 0x17b   : > { %468 = sbr.rel (!%p464_p0) target bundleno = 411 (0x19b), region = 72  ;;  %484 = vst [vmem:[#allocation5] sm:$0xff] (%p464_p0), %v1241_v39 }
 0x17d   : > { %v469_v35 = vld [vmem:[#allocation4] sm:$0x1] (%p464_p0) }
 0x17e   : > { %v470_v37 = vmul.f32 (%p464_p0), 0.125, %v469_v35 }
 0x17f   : > { %v471_v36 = vld [vmem:[#allocation4 + $0x1] sm:$0x1] (%p464_p0) }
 0x180   : > { %v472_v38 = vmul.f32 0.125, %v471_v36  ;;  %v473_v40 = vmul.f32 %v470_v37, %v470_v37 }
 0x182   : > { %v474_v41 = vsub.f32 %v472_v38, %v473_v40 }
 0x184   : > { %v476_v42 = vadd.f32 1e-05, %v474_v41 }
 0x186   : > { %1025 = vrsqrt.f32 %v476_v42 }
 0x193   : > { %v1026_v44 = vpop.eup %1025 }
 0x194   : > { %v478_v45 = vmul.f32 %v1026_v44, %v475_v43 }
 0x196   : > { %479 = vst [vmem:[#allocation4] sm:$0x1] %v478_v45  ;;  %v481_v47 = vmul.f32 %v478_v45, %v470_v37 }
 0x198   : > { %v482_v48 = vsub.f32 %v480_v46, %v481_v47 }
 0x19a   : > { %483 = vst [vmem:[#allocation4 + $0x1] sm:$0x1] %v482_v48 }
 0x19b PF: > { %p839_p1 = scmp.ne.s32.totalorder %s1221_s18, 1 }
 0x19d   : > { %487 = sbr.rel (%p839_p1) target bundleno = 695 (0x2b7), region = 76 }
 0x1a2   : > { %v1027_v49 = vld [vmem:[#allocation12 + $0x38] sm:$0xff]   ;;  %v1242_v50 = vmov 0.0   ;;  %vm1243_vm1 = vmmov 0   ;;  %v1028_v51 = vld [vmem:[#allocation12 + $0x30] sm:$0xff]   ;;  %v1029_v52 = vld [vmem:[#allocation12 + $0x28] sm:$0xff]  }
 0x1a3   : > { %900 = vmatprep.subr.bf16.mxu0 %v1242_v50  ;;  %916 = vmatprep.mubr.msk.bf16.mxu0 %vm1243_vm1, %v1242_v50  ;;  %v1030_v53 = vld [vmem:[#allocation12 + $0x20] sm:$0xff]   ;;  %v1031_v54 = vld [vmem:[#allocation12 + $0x18] sm:$0xff]   ;;  %v1032_v55 = vld [vmem:[#allocation12 + $0x10] sm:$0xff]  }
 0x1a4   : > { %901 = vmatpush3.bf16.xpose.msra.mxu0 %v1027_v49  ;;  %v1033_v56 = vld [vmem:[#allocation12 + $0x8] sm:$0xff]   ;;  %v840_v58 = vld [vmem:[#allocation4] ss:$0 sm:$0xff]  ;;  %v841_v60 = vld [vmem:[#allocation4 + $0x1] ss:$0 sm:$0xff] }
 0x1a5   : > { %902 = vmatprep.subr.bf16.mxu0 %v1242_v50  ;;  %v489_v57 = vld [vmem:[#allocation2] sm:$0xff]  ;;  %v1034_v62 = vld [vmem:[#allocation12] sm:$0xff]  }
 0x1a6   : > { %v495_v59 = vmul.f32 %v840_v58, %v489_v57  ;;  %v842_v1 = vld [vmem:[#allocation14] ss:$0 sm:$0xff]  ;;  %v624_v20 = vld [vmem:[#allocation5 + $0x1] sm:$0x1] }
 0x1a7   : > { %v615_v17 = vld [vmem:[#allocation5] sm:$0x1] }
 0x1a8   : > { %v501_v61 = vadd.f32 %v841_v60, %v495_v59 }
 0x1aa   : > { %v502_v63 = vmax.f32 %v501_v61, 0.0 }
 0x1ac   : > { %903 = vmatpush3.bf16.xpose.msra.mxu0 %v1028_v51  ;;  %v503_v0 = vpack.c.bf16 %v502_v63, %v502_v63 }
 0x1ad   : > { %904 = vmatprep.subr.bf16.mxu0 %v1242_v50 }
 0x1b4   : > { %905 = vmatpush3.bf16.xpose.msra.mxu0 %v1029_v52 }
 0x1b5   : > { %906 = vmatprep.subr.bf16.mxu0 %v1242_v50 }
 0x1bc   : > { %907 = vmatpush3.bf16.xpose.msra.mxu0 %v1030_v53 }
 0x1bd   : > { %908 = vmatprep.subr.bf16.mxu0 %v1242_v50 }
 0x1c4   : > { %909 = vmatpush3.bf16.xpose.msra.mxu0 %v1031_v54 }
 0x1c5   : > { %910 = vmatprep.subr.bf16.mxu0 %v1242_v50 }
 0x1cc   : > { %911 = vmatpush3.bf16.xpose.msra.mxu0 %v1032_v55 }
 0x1cd   : > { %912 = vmatprep.subr.bf16.mxu0 %v1242_v50 }
 0x1d4   : > { %913 = vmatpush3.bf16.xpose.msra.mxu0 %v1033_v56 }
 0x1d5   : > { %914 = vmatprep.subr.bf16.mxu0 %v1242_v50 }
 0x1dc   : > { %915 = vmatpush3.bf16.xpose.msra.mxu0 %v1034_v62 }
 0x1e3   : > { %917 = vmatmul.mubr.bf16.vlgmr.msra.gmra.mxu0 %v503_v0 }
 0x2a3   : > { %v607_v2 = vpop.f32.mrf.mxu0 }
 0x2a4   : > { %v608_v3 = vadd.f32 %v842_v1, %v607_v2 }
 0x2a5   : > { %v918_v4 = vpop.f32.mrf.mxu0 }
 0x2a6   : > { %614 = vst [vmem:[#allocation3] sm:$0xff] %v608_v3  ;;  %v616_v5 = vrot.slane %v608_v3, 4  ;;  %v625_v6 = vmul.f32 %v608_v3, %v608_v3 }
 0x2a7   : > { %v610_v7 = vpop.f32.mrf.mxu0 }
 0x2a8   : > { %v617_v8 = vadd.f32 %v616_v5, %v608_v3  ;;  %v626_v9 = vrot.slane %v625_v6, 4 }
 0x2a9   : > { %v919_v10 = vpop.f32.mrf.mxu0 }
 0x2aa   : > { %v618_v11 = vrot.slane %v617_v8, 2  ;;  %v627_v12 = vadd.f32 %v626_v9, %v625_v6 }
 0x2ac   : > { %v619_v13 = vadd.f32 %v618_v11, %v617_v8  ;;  %v628_v14 = vrot.slane %v627_v12, 2 }
 0x2ae   : > { %v620_v15 = vrot.slane %v619_v13, 1  ;;  %v629_v16 = vadd.f32 %v628_v14, %v627_v12 }
 0x2b0   : > { %v621_v18 = vadd.f32 %v620_v15, %v619_v13  ;;  %v630_v19 = vrot.slane %v629_v16, 1 }
 0x2b2   : > { %v622_v21 = vadd.f32 %v621_v18, %v615_v17  ;;  %v631_v22 = vadd.f32 %v630_v19, %v629_v16 }
 0x2b4   : > { %623 = vst [vmem:[#allocation5] sm:$0x1] %v622_v21  ;;  %v632_v23 = vadd.f32 %v631_v22, %v624_v20 }
 0x2b6   : > { %633 = vst [vmem:[#allocation5 + $0x1] sm:$0x1] %v632_v23 }
 0x2b7 PF: > { %p634_p2 = scmp.eq.s32.totalorder %s1221_s18, 2 }
 0x2b8   : > { %v645_v31 = vld [vmem:[#allocation14 + $0x1] sm:$0x1] (%p634_p2)  ;;  %v650_v34 = vld [vmem:[#allocation14 + $0x2] sm:$0x1] (%p634_p2) }
 0x2b9   : > { %638 = sbr.rel (!%p634_p2) target bundleno = 729 (0x2d9), region = 80 }
 0x2bb   : > { %v639_v24 = vld [vmem:[#allocation5] sm:$0x1] (%p634_p2) }
 0x2bc   : > { %v640_v26 = vmul.f32 (%p634_p2), 0.125, %v639_v24 }
 0x2bd   : > { %v641_v25 = vld [vmem:[#allocation5 + $0x1] sm:$0x1] (%p634_p2) }
 0x2be   : > { %v642_v27 = vmul.f32 0.125, %v641_v25  ;;  %v643_v28 = vmul.f32 %v640_v26, %v640_v26 }
 0x2c0   : > { %v644_v29 = vsub.f32 %v642_v27, %v643_v28 }
 0x2c2   : > { %v646_v30 = vadd.f32 1e-05, %v644_v29 }
 0x2c4   : > { %1035 = vrsqrt.f32 %v646_v30 }
 0x2d1   : > { %v1036_v32 = vpop.eup %1035 }
 0x2d2   : > { %v648_v33 = vmul.f32 %v1036_v32, %v645_v31 }
 0x2d4   : > { %649 = vst [vmem:[#allocation5] sm:$0x1] %v648_v33  ;;  %v651_v35 = vmul.f32 %v648_v33, %v640_v26 }
 0x2d6   : > { %v652_v36 = vsub.f32 %v650_v34, %v651_v35 }
 0x2d8   : > { %653 = vst [vmem:[#allocation5 + $0x1] sm:$0x1] %v652_v36 }
 0x2d9 PF: > { %p852_p7 = scmp.ne.s32.totalorder %s1221_s18, 2 }
 0x2db   : > { %656 = sbr.rel (%p852_p7) target bundleno = 742 (0x2e6), region = 84 }
 0x2e0   : > { %v658_v37 = vld [vmem:[#allocation3] sm:$0xff]  ;;  %v853_v38 = vld [vmem:[#allocation5] ss:$0 sm:$0xff]  ;;  %v854_v39 = vld [vmem:[#allocation5 + $0x1] ss:$0 sm:$0xff] }
 0x2e1   : > { %v664_v40 = vmul.f32 %v853_v38, %v658_v37 }
 0x2e3   : > { %v670_v41 = vadd.f32 %v854_v39, %v664_v40 }
 0x2e5   : > { %671 = vst [vmem:[#allocation15] sm:$0xff] %v670_v41 }
 0x2e6 PF: > { %p1386_p8 = scmp.eq.s32.totalorder %s812_s21, 2  ;;  %s1244_s25 = smov [#allocation15]  }
 0x2e7   : > { %s688_s14 = sshll.u32 %s1244_s25, 4  ;;  %s689_s14 = int_to_ptr.vmem [resolvable:$true] %s688_s14 }
 0x2e8   : > { %s1167_s15 = scalar_lea.vmem %s689_s14, 128  ;;  %s1173_s18 = scalar_lea.vmem %s689_s14, 256 }
 0x2e9   : > { %p1168_p10 = scmp.ne.s32.totalorder %s689_s14, %s1167_s15  ;;  %p1174_p12 = scmp.lt.s32.totalorder %s689_s14, %s689_s14 }
 0x2ea   : > { %p1175_p13 = scmp.lt.s32.totalorder %s1173_s18, %s1167_s15 }
 0x2eb   : > { %p1169_p3 = pnand %p1168_p10, %p1386_p8 }
 0x2ec   : > { %p1176_p6 = por %p1175_p13, %p1174_p12 }
 0x2ed   : > { %p1170_p11 = pneg %p1169_p3 }
 0x2ef   : > { %p1177_p5 = pnand %p1176_p6, %p1170_p11 }
 0x2f1   : > { %1180 = shalt.err (!%p1177_p5)
}
 0x2f2   : > { %941 = dma.vmem_to_hbm [thread:$0]  (%p1386_p8), %s689_s14, 128, %s1414_s5, [#allocation8]  }
 0x2f3 PF: > { %p977_p4 = scmp.ge.s32.totalorder %s1229_s20, 2  ;;  %p978_p9 = scmp.eq.s32.totalorder %s813_s22, 2 }
 0x2f5   : > { %p962_p0 = pnand %p978_p9, %p977_p4 }
 0x2f7   : > { %p963_p1 = pneg %p962_p0 }
 0x2f9   : > { %1216 = dma.done.wait (%p963_p1), [#allocation8], 128  }
 0x2fa   : > { %1218 = vsyncadd (%p963_p1), [#allocation8], 4294967168  ;;  %s23_s20 = sadd.s32 1, %s1229_s20   ;;  %s1423_s18 = smov %s1225_s19 }
 0x2fb   : > { %p20_p2 = scmp.ge.s32.totalorder %s23_s20, 5   ;;  %s1424_s19 = smov %s1426_s23 }
 0x2fd   :  { %22 = sbr.rel (!%p20_p2) target bundleno = 7 (0x7), region = 129 }
 0x302   :  { %706 = vsyncpa [#allocation7], 1 }
 0x303   :  { %708 = vsyncpa [#allocation7 + $0x1], 1 }
 0x304   :  { %709 = vsyncpa [#allocation10], 1 }
 0x305   :  { %710 = vsyncpa [#allocation13], 1 }
 0x306   :  { %711 = vsyncpa [#allocation8], 1 }
 0x307   :  { %713 = vsyncpa [#allocation8 + $0x1], 1 }

</bundles_post_ra>
